<compile_context>
chip_gen: v7x
topology: tpu7x:2x2x1
jax: 0.10.0
libtpu: 0.0.40
codegen_flags: <defaults>
</compile_context>

<pallas_src>
import numpy as np
import jax
import jax.numpy as jnp
from jax import lax
from jax.experimental import pallas as pl
from jax.experimental.pallas import tpu as pltpu

_EPS = 1e-12  # matches torch.nn.functional.normalize default eps


def _camera_opt_kernel(pose_ref, cam_ref, out_ref):
    def prow(i):
        return pose_ref[i:i + 1, :]                               # (1, TB) lane-dense row

    # translation delta
    dxs = [prow(0), prow(1), prow(2)]
    # 6d rotation delta + identity buffer [1, 0, 0, 0, 1, 0]
    a1x = prow(3) + 1.0
    a1y = prow(4)
    a1z = prow(5)
    a2x = prow(6)
    a2y = prow(7) + 1.0
    a2z = prow(8)

    # ---- rotation_6d_to_matrix (Gram-Schmidt) on (1, TB) rows (VPU + EUP rsqrt).
    # 1 / max(||v||, eps) == rsqrt(max(||v||^2, eps^2))  (sqrt is monotone; eps^2 = 1e-24 is
    # representable in f32), so semantics match F.normalize exactly.
    eps2 = _EPS * _EPS
    inv1 = lax.rsqrt(jnp.maximum(a1x * a1x + a1y * a1y + a1z * a1z, eps2))
    b1x, b1y, b1z = a1x * inv1, a1y * inv1, a1z * inv1

    d = b1x * a2x + b1y * a2y + b1z * a2z
    u2x, u2y, u2z = a2x - d * b1x, a2y - d * b1y, a2z - d * b1z
    inv2 = lax.rsqrt(jnp.maximum(u2x * u2x + u2y * u2y + u2z * u2z, eps2))
    b2x, b2y, b2z = u2x * inv2, u2y * inv2, u2z * inv2

    b3x = b1y * b2z - b1z * b2y
    b3y = b1z * b2x - b1x * b2z
    b3z = b1x * b2y - b1y * b2x

    # transform rows 0..2 (3x3 rotation part); row 3 is (0,0,0,1) and is folded analytically.
    t = [b1x, b1y, b1z,
         b2x, b2y, b2z,
         b3x, b3y, b3z]

    # out[b, i, k] = sum_j cam[b, i, j] * T[b, j, k]   (unrolled, lane-dense).
    # Stream each 4-row block straight to out_ref and read cam rows lazily to keep
    # live ranges (and hence vreg pressure) short.
    for i in range(4):
        ci = [cam_ref[4 * i + j: 4 * i + j + 1, :] for j in range(4)]   # (1, TB) each
        rows_i = []
        for k in range(3):                                              # T[3, k] == 0
            rows_i.append(ci[0] * t[k] + ci[1] * t[3 + k] + ci[2] * t[6 + k])
        rows_i.append(ci[0] * dxs[0] + ci[1] * dxs[1] + ci[2] * dxs[2] + ci[3])  # T[3,3] == 1
        out_ref[pl.ds(4 * i, 4), :] = jnp.concatenate(rows_i, axis=0)   # lane-dense (4, TB) store


def _round_up(x, m):
    return (x + m - 1) // m * m


def camera_opt_forward(camtoworlds, embed_ids, embed_weight, *, tile_b=512):
    """Pallas equivalent of CameraOptModule(n).forward(camtoworlds, embed_ids).

    camtoworlds: (..., 4, 4) float32
    embed_ids:   (...,)      int
    embed_weight:(n, 9)      float32 (the nn.Embedding weight)
    """
    batch_shape = camtoworlds.shape[:-2]
    assert embed_ids.shape == batch_shape
    B = int(np.prod(batch_shape)) if batch_shape else 1

    # Lane-aligned batch tiling.
    b128 = _round_up(max(B, 1), 128)
    tb = max(128, min(int(tile_b), b128))
    # Prefer >= 2 grid steps when the batch allows it, so ("parallel",) dimension semantics
    # can shard the grid across v7x's 2 TensorCores (no-op on v5e/v6e).
    if b128 > 128 and b128 <= tb:
        tb = _round_up((b128 + 1) // 2, 128)
    Bp = _round_up(b128, tb)
    num_tiles = Bp // tb

    ids = embed_ids.reshape(B).astype(jnp.int32)

    # Embedding gather done by XLA in the wrapper (O(B) work); gathering along axis 1 of W^T
    # produces the lane-dense (9, B) layout directly, so no extra transpose pass is needed.
    # NOTE: out-of-range ids are clamped by XLA gather semantics; PyTorch's nn.Embedding
    # would raise instead.
    pose_t = jnp.take(jnp.transpose(embed_weight.astype(jnp.float32)), ids, axis=1)   # (9, B)
    cam_t = jnp.transpose(camtoworlds.reshape(B, 16).astype(jnp.float32))              # (16, B)

    if Bp != B:
        pose_t = jnp.pad(pose_t, ((0, 0), (0, Bp - B)))   # zero pose -> identity transform
        cam_t = jnp.pad(cam_t, ((0, 0), (0, Bp - B)))     # padded columns are discarded

    out_t = pl.pallas_call(
        _camera_opt_kernel,
        out_shape=jax.ShapeDtypeStruct((16, Bp), jnp.float32),
        grid=(num_tiles,),
        in_specs=[
            pl.BlockSpec((9, tb), lambda i: (0, i)),      # pose deltas, lane-dense
            pl.BlockSpec((16, tb), lambda i: (0, i)),     # cam^T tile, lane-dense
        ],
        out_specs=pl.BlockSpec((16, tb), lambda i: (0, i)),
        compiler_params=pltpu.CompilerParams(
            dimension_semantics=("parallel",),
            # Let XLA fuse the wrapper-side gather / transpose / pad into the operands
            # instead of materializing separate HBM passes.
            allow_input_fusion=[True, True],
        ),
    )(pose_t, cam_t)

    # TODO(synk): if the downstream consumer can accept the (16, B) layout, skip this
    # output transpose to save one more HBM pass.
    return jnp.transpose(out_t[:, :B]).reshape(*batch_shape, 4, 4)


def _reference(camtoworlds, embed_ids, weight):
    """Pure-JAX reference mirroring the PyTorch module (for a sanity check)."""
    pose = weight[embed_ids]                          # (..., 9)
    dx, drot = pose[..., :3], pose[..., 3:]
    identity = jnp.array([1., 0., 0., 0., 1., 0.], jnp.float32)
    d6 = drot + identity
    a1, a2 = d6[..., :3], d6[..., 3:]

    def normalize(v):
        return v / jnp.maximum(
            jnp.sqrt(jnp.sum(v * v, axis=-1, keepdims=True)), _EPS)

    b1 = normalize(a1)
    b2 = normalize(a2 - jnp.sum(b1 * a2, -1, keepdims=True) * b1)
    b3 = jnp.cross(b1, b2)
    rot = jnp.stack([b1, b2, b3], axis=-2)            # (..., 3, 3)
    bshape = embed_ids.shape
    transform = jnp.broadcast_to(jnp.eye(4, dtype=jnp.float32), (*bshape, 4, 4))
    transform = transform.at[..., :3, :3].set(rot).at[..., :3, 3].set(dx)
    return camtoworlds @ transform


if __name__ == "__main__":
    key = jax.random.PRNGKey(0)
    k_w, k_ids, k_cam = jax.random.split(key, 3)

    n_embeds = 16
    batch_shape = (2, 4)   # multi-dim batch, flattened to B=8 inside the wrapper

    # Deterministic parameter init (module's random_init(std=0.01) analogue).
    embed_weight = 0.01 * jax.random.normal(k_w, (n_embeds, 9), dtype=jnp.float32)
    embed_ids = jax.random.randint(k_ids, batch_shape, 0, n_embeds, dtype=jnp.int32)
    camtoworlds = jax.random.normal(k_cam, (*batch_shape, 4, 4), dtype=jnp.float32)

    out = camera_opt_forward(camtoworlds, embed_ids, embed_weight)
    out = jax.block_until_ready(out)

    ref = _reference(camtoworlds, embed_ids, embed_weight)
    assert out.shape == (*batch_shape, 4, 4)
    assert np.allclose(np.asarray(out), np.asarray(ref), atol=1e-5, rtol=1e-5)

    print("KERNEL_OK")
</pallas_src>

<mosaic_0001>
module attributes {stable_mosaic.version = 11 : i64} {
  func.func @_camera_opt_kernel(%arg0: i32, %arg1: memref<9x128xf32, #tpu.memory_space<vmem>>, %arg2: memref<16x128xf32, #tpu.memory_space<vmem>>, %arg3: memref<16x128xf32, #tpu.memory_space<vmem>>) attributes {dimension_semantics = [#tpu.dimension_semantics<parallel>], iteration_bounds = array<i64: 1>, scalar_prefetch = 0 : i64, scratch_operands = 0 : i64, tpu.core_type = #tpu.core_type<tc>, window_params = [{transform_indices = @transform_0, window_bounds = array<i64: 9, 128>}, {transform_indices = @transform_1, window_bounds = array<i64: 16, 128>}, {transform_indices = @transform_2, window_bounds = array<i64: 16, 128>}]} {
    %c0 = arith.constant 0 : index
    %c0_0 = arith.constant 0 : index
    %0 = vector.load %arg1[%c0, %c0_0] : memref<9x128xf32, #tpu.memory_space<vmem>>, vector<1x128xf32>
    %c1 = arith.constant 1 : index
    %c0_1 = arith.constant 0 : index
    %1 = vector.load %arg1[%c1, %c0_1] : memref<9x128xf32, #tpu.memory_space<vmem>>, vector<1x128xf32>
    %c2 = arith.constant 2 : index
    %c0_2 = arith.constant 0 : index
    %2 = vector.load %arg1[%c2, %c0_2] : memref<9x128xf32, #tpu.memory_space<vmem>>, vector<1x128xf32>
    %c3 = arith.constant 3 : index
    %c0_3 = arith.constant 0 : index
    %3 = vector.load %arg1[%c3, %c0_3] : memref<9x128xf32, #tpu.memory_space<vmem>>, vector<1x128xf32>
    %cst = arith.constant 1.000000e+00 : f32
    %4 = vector.broadcast %cst : f32 to vector<1x128xf32>
    %5 = arith.addf %3, %4 : vector<1x128xf32>
    %c4 = arith.constant 4 : index
    %c0_4 = arith.constant 0 : index
    %6 = vector.load %arg1[%c4, %c0_4] : memref<9x128xf32, #tpu.memory_space<vmem>>, vector<1x128xf32>
    %c5 = arith.constant 5 : index
    %c0_5 = arith.constant 0 : index
    %7 = vector.load %arg1[%c5, %c0_5] : memref<9x128xf32, #tpu.memory_space<vmem>>, vector<1x128xf32>
    %c6 = arith.constant 6 : index
    %c0_6 = arith.constant 0 : index
    %8 = vector.load %arg1[%c6, %c0_6] : memref<9x128xf32, #tpu.memory_space<vmem>>, vector<1x128xf32>
    %c7 = arith.constant 7 : index
    %c0_7 = arith.constant 0 : index
    %9 = vector.load %arg1[%c7, %c0_7] : memref<9x128xf32, #tpu.memory_space<vmem>>, vector<1x128xf32>
    %cst_8 = arith.constant 1.000000e+00 : f32
    %10 = vector.broadcast %cst_8 : f32 to vector<1x128xf32>
    %11 = arith.addf %9, %10 : vector<1x128xf32>
    %c8 = arith.constant 8 : index
    %c0_9 = arith.constant 0 : index
    %12 = vector.load %arg1[%c8, %c0_9] : memref<9x128xf32, #tpu.memory_space<vmem>>, vector<1x128xf32>
    %13 = arith.mulf %5, %5 : vector<1x128xf32>
    %14 = arith.mulf %6, %6 : vector<1x128xf32>
    %15 = arith.addf %13, %14 : vector<1x128xf32>
    %16 = arith.mulf %7, %7 : vector<1x128xf32>
    %17 = arith.addf %15, %16 : vector<1x128xf32>
    %cst_10 = arith.constant 1.000000e-24 : f32
    %18 = vector.broadcast %cst_10 : f32 to vector<1x128xf32>
    %19 = arith.maximumf %17, %18 : vector<1x128xf32>
    %20 = math.rsqrt %19 : vector<1x128xf32>
    %21 = arith.mulf %5, %20 : vector<1x128xf32>
    %22 = arith.mulf %6, %20 : vector<1x128xf32>
    %23 = arith.mulf %7, %20 : vector<1x128xf32>
    %24 = arith.mulf %21, %8 : vector<1x128xf32>
    %25 = arith.mulf %22, %11 : vector<1x128xf32>
    %26 = arith.addf %24, %25 : vector<1x128xf32>
    %27 = arith.mulf %23, %12 : vector<1x128xf32>
    %28 = arith.addf %26, %27 : vector<1x128xf32>
    %29 = arith.mulf %28, %21 : vector<1x128xf32>
    %30 = arith.subf %8, %29 : vector<1x128xf32>
    %31 = arith.mulf %28, %22 : vector<1x128xf32>
    %32 = arith.subf %11, %31 : vector<1x128xf32>
    %33 = arith.mulf %28, %23 : vector<1x128xf32>
    %34 = arith.subf %12, %33 : vector<1x128xf32>
    %35 = arith.mulf %30, %30 : vector<1x128xf32>
    %36 = arith.mulf %32, %32 : vector<1x128xf32>
    %37 = arith.addf %35, %36 : vector<1x128xf32>
    %38 = arith.mulf %34, %34 : vector<1x128xf32>
    %39 = arith.addf %37, %38 : vector<1x128xf32>
    %cst_11 = arith.constant 1.000000e-24 : f32
    %40 = vector.broadcast %cst_11 : f32 to vector<1x128xf32>
    %41 = arith.maximumf %39, %40 : vector<1x128xf32>
    %42 = math.rsqrt %41 : vector<1x128xf32>
    %43 = arith.mulf %30, %42 : vector<1x128xf32>
    %44 = arith.mulf %32, %42 : vector<1x128xf32>
    %45 = arith.mulf %34, %42 : vector<1x128xf32>
    %46 = arith.mulf %22, %45 : vector<1x128xf32>
    %47 = arith.mulf %23, %44 : vector<1x128xf32>
    %48 = arith.subf %46, %47 : vector<1x128xf32>
    %49 = arith.mulf %23, %43 : vector<1x128xf32>
    %50 = arith.mulf %21, %45 : vector<1x128xf32>
    %51 = arith.subf %49, %50 : vector<1x128xf32>
    %52 = arith.mulf %21, %44 : vector<1x128xf32>
    %53 = arith.mulf %22, %43 : vector<1x128xf32>
    %54 = arith.subf %52, %53 : vector<1x128xf32>
    %c0_12 = arith.constant 0 : index
    %c0_13 = arith.constant 0 : index
    %55 = vector.load %arg2[%c0_12, %c0_13] : memref<16x128xf32, #tpu.memory_space<vmem>>, vector<1x128xf32>
    %c1_14 = arith.constant 1 : index
    %c0_15 = arith.constant 0 : index
    %56 = vector.load %arg2[%c1_14, %c0_15] : memref<16x128xf32, #tpu.memory_space<vmem>>, vector<1x128xf32>
    %c2_16 = arith.constant 2 : index
    %c0_17 = arith.constant 0 : index
    %57 = vector.load %arg2[%c2_16, %c0_17] : memref<16x128xf32, #tpu.memory_space<vmem>>, vector<1x128xf32>
    %c3_18 = arith.constant 3 : index
    %c0_19 = arith.constant 0 : index
    %58 = vector.load %arg2[%c3_18, %c0_19] : memref<16x128xf32, #tpu.memory_space<vmem>>, vector<1x128xf32>
    %59 = arith.mulf %55, %21 : vector<1x128xf32>
    %60 = arith.mulf %56, %43 : vector<1x128xf32>
    %61 = arith.addf %59, %60 : vector<1x128xf32>
    %62 = arith.mulf %57, %48 : vector<1x128xf32>
    %63 = arith.addf %61, %62 : vector<1x128xf32>
    %64 = arith.mulf %55, %22 : vector<1x128xf32>
    %65 = arith.mulf %56, %44 : vector<1x128xf32>
    %66 = arith.addf %64, %65 : vector<1x128xf32>
    %67 = arith.mulf %57, %51 : vector<1x128xf32>
    %68 = arith.addf %66, %67 : vector<1x128xf32>
    %69 = arith.mulf %55, %23 : vector<1x128xf32>
    %70 = arith.mulf %56, %45 : vector<1x128xf32>
    %71 = arith.addf %69, %70 : vector<1x128xf32>
    %72 = arith.mulf %57, %54 : vector<1x128xf32>
    %73 = arith.addf %71, %72 : vector<1x128xf32>
    %74 = arith.mulf %55, %0 : vector<1x128xf32>
    %75 = arith.mulf %56, %1 : vector<1x128xf32>
    %76 = arith.addf %74, %75 : vector<1x128xf32>
    %77 = arith.mulf %57, %2 : vector<1x128xf32>
    %78 = arith.addf %76, %77 : vector<1x128xf32>
    %79 = arith.addf %78, %58 : vector<1x128xf32>
    %80 = tpu.concatenate %63, %68, %73, %79 in 0 : vector<1x128xf32>, vector<1x128xf32>, vector<1x128xf32>, vector<1x128xf32> -> vector<4x128xf32>
    %c0_20 = arith.constant 0 : index
    %c0_21 = arith.constant 0 : index
    %81 = vector.load %arg3[%c0_20, %c0_21] : memref<16x128xf32, #tpu.memory_space<vmem>>, vector<4x128xf32>
    tpu.vector_store %arg3[%c0_20, %c0_21], %80 {strides = array<i32>} : memref<16x128xf32, #tpu.memory_space<vmem>>, vector<4x128xf32>,
    %c4_22 = arith.constant 4 : index
    %c0_23 = arith.constant 0 : index
    %82 = vector.load %arg2[%c4_22, %c0_23] : memref<16x128xf32, #tpu.memory_space<vmem>>, vector<1x128xf32>
    %c5_24 = arith.constant 5 : index
    %c0_25 = arith.constant 0 : index
    %83 = vector.load %arg2[%c5_24, %c0_25] : memref<16x128xf32, #tpu.memory_space<vmem>>, vector<1x128xf32>
    %c6_26 = arith.constant 6 : index
    %c0_27 = arith.constant 0 : index
    %84 = vector.load %arg2[%c6_26, %c0_27] : memref<16x128xf32, #tpu.memory_space<vmem>>, vector<1x128xf32>
    %c7_28 = arith.constant 7 : index
    %c0_29 = arith.constant 0 : index
    %85 = vector.load %arg2[%c7_28, %c0_29] : memref<16x128xf32, #tpu.memory_space<vmem>>, vector<1x128xf32>
    %86 = arith.mulf %82, %21 : vector<1x128xf32>
    %87 = arith.mulf %83, %43 : vector<1x128xf32>
    %88 = arith.addf %86, %87 : vector<1x128xf32>
    %89 = arith.mulf %84, %48 : vector<1x128xf32>
    %90 = arith.addf %88, %89 : vector<1x128xf32>
    %91 = arith.mulf %82, %22 : vector<1x128xf32>
    %92 = arith.mulf %83, %44 : vector<1x128xf32>
    %93 = arith.addf %91, %92 : vector<1x128xf32>
    %94 = arith.mulf %84, %51 : vector<1x128xf32>
    %95 = arith.addf %93, %94 : vector<1x128xf32>
    %96 = arith.mulf %82, %23 : vector<1x128xf32>
    %97 = arith.mulf %83, %45 : vector<1x128xf32>
    %98 = arith.addf %96, %97 : vector<1x128xf32>
    %99 = arith.mulf %84, %54 : vector<1x128xf32>
    %100 = arith.addf %98, %99 : vector<1x128xf32>
    %101 = arith.mulf %82, %0 : vector<1x128xf32>
    %102 = arith.mulf %83, %1 : vector<1x128xf32>
    %103 = arith.addf %101, %102 : vector<1x128xf32>
    %104 = arith.mulf %84, %2 : vector<1x128xf32>
    %105 = arith.addf %103, %104 : vector<1x128xf32>
    %106 = arith.addf %105, %85 : vector<1x128xf32>
    %107 = tpu.concatenate %90, %95, %100, %106 in 0 : vector<1x128xf32>, vector<1x128xf32>, vector<1x128xf32>, vector<1x128xf32> -> vector<4x128xf32>
    %c4_30 = arith.constant 4 : index
    %c0_31 = arith.constant 0 : index
    %108 = vector.load %arg3[%c4_30, %c0_31] : memref<16x128xf32, #tpu.memory_space<vmem>>, vector<4x128xf32>
    tpu.vector_store %arg3[%c4_30, %c0_31], %107 {strides = array<i32>} : memref<16x128xf32, #tpu.memory_space<vmem>>, vector<4x128xf32>,
    %c8_32 = arith.constant 8 : index
    %c0_33 = arith.constant 0 : index
    %109 = vector.load %arg2[%c8_32, %c0_33] : memref<16x128xf32, #tpu.memory_space<vmem>>, vector<1x128xf32>
    %c9 = arith.constant 9 : index
    %c0_34 = arith.constant 0 : index
    %110 = vector.load %arg2[%c9, %c0_34] : memref<16x128xf32, #tpu.memory_space<vmem>>, vector<1x128xf32>
    %c10 = arith.constant 10 : index
    %c0_35 = arith.constant 0 : index
    %111 = vector.load %arg2[%c10, %c0_35] : memref<16x128xf32, #tpu.memory_space<vmem>>, vector<1x128xf32>
    %c11 = arith.constant 11 : index
    %c0_36 = arith.constant 0 : index
    %112 = vector.load %arg2[%c11, %c0_36] : memref<16x128xf32, #tpu.memory_space<vmem>>, vector<1x128xf32>
    %113 = arith.mulf %109, %21 : vector<1x128xf32>
    %114 = arith.mulf %110, %43 : vector<1x128xf32>
    %115 = arith.addf %113, %114 : vector<1x128xf32>
    %116 = arith.mulf %111, %48 : vector<1x128xf32>
    %117 = arith.addf %115, %116 : vector<1x128xf32>
    %118 = arith.mulf %109, %22 : vector<1x128xf32>
    %119 = arith.mulf %110, %44 : vector<1x128xf32>
    %120 = arith.addf %118, %119 : vector<1x128xf32>
    %121 = arith.mulf %111, %51 : vector<1x128xf32>
    %122 = arith.addf %120, %121 : vector<1x128xf32>
    %123 = arith.mulf %109, %23 : vector<1x128xf32>
    %124 = arith.mulf %110, %45 : vector<1x128xf32>
    %125 = arith.addf %123, %124 : vector<1x128xf32>
    %126 = arith.mulf %111, %54 : vector<1x128xf32>
    %127 = arith.addf %125, %126 : vector<1x128xf32>
    %128 = arith.mulf %109, %0 : vector<1x128xf32>
    %129 = arith.mulf %110, %1 : vector<1x128xf32>
    %130 = arith.addf %128, %129 : vector<1x128xf32>
    %131 = arith.mulf %111, %2 : vector<1x128xf32>
    %132 = arith.addf %130, %131 : vector<1x128xf32>
    %133 = arith.addf %132, %112 : vector<1x128xf32>
    %134 = tpu.concatenate %117, %122, %127, %133 in 0 : vector<1x128xf32>, vector<1x128xf32>, vector<1x128xf32>, vector<1x128xf32> -> vector<4x128xf32>
    %c8_37 = arith.constant 8 : index
    %c0_38 = arith.constant 0 : index
    %135 = vector.load %arg3[%c8_37, %c0_38] : memref<16x128xf32, #tpu.memory_space<vmem>>, vector<4x128xf32>
    tpu.vector_store %arg3[%c8_37, %c0_38], %134 {strides = array<i32>} : memref<16x128xf32, #tpu.memory_space<vmem>>, vector<4x128xf32>,
    %c12 = arith.constant 12 : index
    %c0_39 = arith.constant 0 : index
    %136 = vector.load %arg2[%c12, %c0_39] : memref<16x128xf32, #tpu.memory_space<vmem>>, vector<1x128xf32>
    %c13 = arith.constant 13 : index
    %c0_40 = arith.constant 0 : index
    %137 = vector.load %arg2[%c13, %c0_40] : memref<16x128xf32, #tpu.memory_space<vmem>>, vector<1x128xf32>
    %c14 = arith.constant 14 : index
    %c0_41 = arith.constant 0 : index
    %138 = vector.load %arg2[%c14, %c0_41] : memref<16x128xf32, #tpu.memory_space<vmem>>, vector<1x128xf32>
    %c15 = arith.constant 15 : index
    %c0_42 = arith.constant 0 : index
    %139 = vector.load %arg2[%c15, %c0_42] : memref<16x128xf32, #tpu.memory_space<vmem>>, vector<1x128xf32>
    %140 = arith.mulf %136, %21 : vector<1x128xf32>
    %141 = arith.mulf %137, %43 : vector<1x128xf32>
    %142 = arith.addf %140, %141 : vector<1x128xf32>
    %143 = arith.mulf %138, %48 : vector<1x128xf32>
    %144 = arith.addf %142, %143 : vector<1x128xf32>
    %145 = arith.mulf %136, %22 : vector<1x128xf32>
    %146 = arith.mulf %137, %44 : vector<1x128xf32>
    %147 = arith.addf %145, %146 : vector<1x128xf32>
    %148 = arith.mulf %138, %51 : vector<1x128xf32>
    %149 = arith.addf %147, %148 : vector<1x128xf32>
    %150 = arith.mulf %136, %23 : vector<1x128xf32>
    %151 = arith.mulf %137, %45 : vector<1x128xf32>
    %152 = arith.addf %150, %151 : vector<1x128xf32>
    %153 = arith.mulf %138, %54 : vector<1x128xf32>
    %154 = arith.addf %152, %153 : vector<1x128xf32>
    %155 = arith.mulf %136, %0 : vector<1x128xf32>
    %156 = arith.mulf %137, %1 : vector<1x128xf32>
    %157 = arith.addf %155, %156 : vector<1x128xf32>
    %158 = arith.mulf %138, %2 : vector<1x128xf32>
    %159 = arith.addf %157, %158 : vector<1x128xf32>
    %160 = arith.addf %159, %139 : vector<1x128xf32>
    %161 = tpu.concatenate %144, %149, %154, %160 in 0 : vector<1x128xf32>, vector<1x128xf32>, vector<1x128xf32>, vector<1x128xf32> -> vector<4x128xf32>
    %c12_43 = arith.constant 12 : index
    %c0_44 = arith.constant 0 : index
    %162 = vector.load %arg3[%c12_43, %c0_44] : memref<16x128xf32, #tpu.memory_space<vmem>>, vector<4x128xf32>
    tpu.vector_store %arg3[%c12_43, %c0_44], %161 {strides = array<i32>} : memref<16x128xf32, #tpu.memory_space<vmem>>, vector<4x128xf32>,
    return
  }
  func.func @transform_0(%arg0: i32) -> (i32, i32) {
    %c0_i32 = arith.constant 0 : i32
    %c0_i32_0 = arith.constant 0 : i32
    return %c0_i32, %arg0 : i32, i32
  }
  func.func @transform_1(%arg0: i32) -> (i32, i32) {
    %c0_i32 = arith.constant 0 : i32
    %c0_i32_0 = arith.constant 0 : i32
    return %c0_i32, %arg0 : i32, i32
  }
  func.func @transform_2(%arg0: i32) -> (i32, i32) {
    %c0_i32 = arith.constant 0 : i32
    %c0_i32_0 = arith.constant 0 : i32
    return %c0_i32, %arg0 : i32, i32
  }
}

</mosaic_0001>

<bundles_post_ra>
// kernel: tpu_custom_call.1
= control target key start
LH: loop header
LB: loop body
LE: loop exit
PB: predicated region body
PF: predicated region fallthrough
CT: control target
= control target key end

     0   :  { %7 = vsyncpa [#allocation3], 0  ;;  %s557_s0 = inlined_call_operand.hbm [shape: f32[9,128], index: 0, kind: input, shape index: {}]   ;;  %s558_s1 = inlined_call_operand.hbm [shape: f32[16,128], index: 1, kind: input, shape index: {}]   ;;  %s559_s2 = inlined_call_operand.hbm [shape: f32[16,128], index: 2, kind: output, shape index: {}]  }
   0x1   :  { %8 = vsyncpa [#allocation6], 0 }
   0x2   :  { %9 = vsyncpa [#allocation4], 0  ;;  %s345_s9 = smov [#allocation2]   ;;  %s273_s13 = scalar_lea.hbm %s557_s0, 256 }
   0x3   :  { %s15_s10 = sshll.u32 %s345_s9, 4  ;;  %p274_p0 = scmp.ne.s32.totalorder %s557_s0, %s273_s13  ;;  %s16_s10 = int_to_ptr.vmem [resolvable:$true] %s15_s10 }
   0x4   :  { %p277_p1 = scmp.lt.u32.totalorder %s273_s13, %s557_s0 }
   0x6   :  { %p279_p2 = pnand %p277_p1, %p274_p0 }
   0x8   :  { %282 = shalt.err (!%p279_p2)
}
   0x9   :  { %s283_s18 = scalar_lea.vmem %s16_s10, 256  ;;  %p288_p4 = scmp.lt.s32.totalorder %s16_s10, %s16_s10 }
   0xa   :  { %p284_p3 = scmp.ne.s32.totalorder %s16_s10, %s283_s18  ;;  %p289_p5 = scmp.lt.s32.totalorder %s283_s18, %s283_s18 }
   0xc   :  { %p290_p6 = por %p289_p5, %p288_p4 }
   0xe   :  { %p291_p7 = pnand %p290_p6, %p284_p3 }
  0x10   :  { %294 = shalt.err (!%p291_p7)
}
  0x11   :  { %s346_s19 = smov 128   ;;  %s347_s20 = smov 8  }
  0x12   :  { %21 = dma.hbm_to_vmem [thread:$0]  %s557_s0, 256, %s16_s10, [#allocation3], %s346_s19, %s346_s19, %s347_s20  }
  0x13   :  { %s348_s23 = smov [#allocation5]   ;;  %s295_s27 = scalar_lea.hbm %s558_s1, 256 }
  0x14   :  { %s27_s24 = sshll.u32 %s348_s23, 4  ;;  %p296_p8 = scmp.ne.s32.totalorder %s558_s1, %s295_s27  ;;  %s28_s24 = int_to_ptr.vmem [resolvable:$true] %s27_s24 }
  0x15   :  { %p299_p9 = scmp.lt.u32.totalorder %s295_s27, %s558_s1 }
  0x17   :  { %p301_p10 = pnand %p299_p9, %p296_p8 }
  0x19   :  { %304 = shalt.err (!%p301_p10)
}
  0x1a   :  { %s305_s4 = scalar_lea.vmem %s28_s24, 256  ;;  %p310_p12 = scmp.lt.s32.totalorder %s28_s24, %s28_s24 }
  0x1b   :  { %p306_p11 = scmp.ne.s32.totalorder %s28_s24, %s305_s4  ;;  %p311_p13 = scmp.lt.s32.totalorder %s305_s4, %s305_s4 }
  0x1d   :  { %p312_p0 = por %p311_p13, %p310_p12 }
  0x1f   :  { %p313_p1 = pnand %p312_p0, %p306_p11 }
  0x21   :  { %316 = shalt.err (!%p313_p1)
}
  0x22   :  { %33 = dma.hbm_to_vmem [thread:$0]  %s558_s1, 256, %s28_s24, [#allocation6], %s346_s19, %s346_s19, %s347_s20  }
  0x23   :  { %339 = dma.done.wait [#allocation3], 256  }
  0x24   :  { %340 = vsyncadd [#allocation3], 4294967040 }
  0x25   :  { %341 = dma.done.wait [#allocation6], 256  }
  0x26   :  { %342 = vsyncadd [#allocation6], 4294967040  ;;  %v43_v0 = vld [vmem:[#allocation2 + $0x3] sm:$0x1]  ;;  %v45_v1 = vld [vmem:[#allocation2 + $0x4] sm:$0x1] }
  0x27   :  { %v46_v2 = vld [vmem:[#allocation2 + $0x5] sm:$0x1]  ;;  %v44_v3 = vadd.f32 1.0, %v43_v0  ;;  %v52_v4 = vmul.f32 %v45_v1, %v45_v1  ;;  %v48_v10 = vld [vmem:[#allocation2 + $0x7] sm:$0x1]  ;;  %vm125_vm0 = vcmask 1040384  }
  0x28   :  { %v54_v6 = vmul.f32 %v46_v2, %v46_v2  ;;  %v49_v11 = vadd.f32 1.0, %v48_v10  ;;  %v47_v13 = vld [vmem:[#allocation2 + $0x6] sm:$0x1]  ;;  %v50_v14 = vld [vmem:[#allocation2 + $0x8] sm:$0x1]  ;;  %vm127_vm1 = vcmask 1041408  }
  0x29   :  { %v51_v5 = vmul.f32 %v44_v3, %v44_v3  ;;  %v40_v22 = vld [vmem:[#allocation2] sm:$0x1]  ;;  %v41_v24 = vld [vmem:[#allocation2 + $0x1] sm:$0x1]  ;;  %v91_v25 = vld [vmem:[#allocation5] sm:$0x1] }
  0x2a   :  { %v404_v26 = vld [vmem:[#allocation5 + $0x1] sm:$0x1]  ;;  %v132_v30 = vld [vmem:[#allocation5 + $0x4] sm:$0x1]  ;;  %v409_v31 = vld [vmem:[#allocation5 + $0x5] sm:$0x1]  ;;  %v110_v37 = vmul.f32 %v91_v25, %v40_v22 }
  0x2b   :  { %v53_v7 = vadd.f32 %v52_v4, %v51_v5  ;;  %v411_v32 = vld [vmem:[#allocation5 + $0x8] sm:$0x1]  ;;  %v413_v33 = vld [vmem:[#allocation5 + $0x9] sm:$0x1]  ;;  %v111_v38 = vmul.f32 %v404_v26, %v41_v24  ;;  %v151_v39 = vmul.f32 %v132_v30, %v40_v22  ;;  %v152_v40 = vmul.f32 %v409_v31, %v41_v24  ;;  %v42_v42 = vld [vmem:[#allocation2 + $0x2] sm:$0x1] }
  0x2c   :  { %v189_v41 = vmul.f32 %v411_v32, %v40_v22  ;;  %v418_v46 = vld [vmem:[#allocation5 + $0x2] sm:$0x1]  ;;  %v420_v47 = vld [vmem:[#allocation5 + $0x6] sm:$0x1]  ;;  %v190_v48 = vmul.f32 %v413_v33, %v41_v24  ;;  %v423_v49 = vld [vmem:[#allocation5 + $0xa] sm:$0x1] }
  0x2d   :  { %v55_v8 = vadd.f32 %v54_v6, %v53_v7  ;;  %v208_v51 = vld [vmem:[#allocation5 + $0xc] sm:$0x1]  ;;  %v425_v52 = vld [vmem:[#allocation5 + $0xd] sm:$0x1]  ;;  %v112_v53 = vadd.f32 %v111_v38, %v110_v37  ;;  %v113_v54 = vmul.f32 %v418_v46, %v42_v42  ;;  %v154_v55 = vmul.f32 %v420_v47, %v42_v42  ;;  %v431_v63 = vld [vmem:[#allocation5 + $0xe] sm:$0x1] }
  0x2e   :  { %v153_v57 = vadd.f32 %v152_v40, %v151_v39  ;;  %v191_v58 = vadd.f32 %v190_v48, %v189_v41  ;;  %v192_v59 = vmul.f32 %v423_v49, %v42_v42  ;;  %v227_v60 = vmul.f32 %v208_v51, %v40_v22  ;;  %v135_v4 = vld [vmem:[#allocation5 + $0x7] sm:$0x1]  ;;  %v173_v5 = vld [vmem:[#allocation5 + $0xb] sm:$0x1]  ;;  %s349_s1 = smov [#allocation7]  }
  0x2f   :  { %v56_v9 = vmax.f32 %v55_v8, 1e-24  ;;  %v228_v61 = vmul.f32 %v425_v52, %v41_v24  ;;  %v114_v0 = vadd.f32 %v113_v54, %v112_v53  ;;  %v230_v7 = vmul.f32 %v431_v63, %v42_v42  ;;  %s251_s6 = sshll.u32 %s349_s1, 4  ;;  %s252_s6 = int_to_ptr.vmem [resolvable:$true] %s251_s6 }
  0x30   :  { %vm129_vm2 = vcmask 1042432   ;;  %s317_s7 = scalar_lea.vmem %s252_s6, 256  ;;  %p322_p3 = scmp.lt.s32.totalorder %s252_s6, %s252_s6 }
  0x31   :  { %269 = vrsqrt.f32 %v56_v9  ;;  %v229_v6 = vadd.f32 %v228_v61, %v227_v60  ;;  %p318_p2 = scmp.ne.s32.totalorder %s252_s6, %s317_s7  ;;  %p323_p4 = scmp.lt.s32.totalorder %s317_s7, %s317_s7 }
  0x33   :  { %p324_p5 = por %p323_p4, %p322_p3 }
  0x35   :  { %p325_p6 = pnand %p324_p5, %p318_p2 }
  0x3b   :  { %v270_v12 = vpop.eup %269 }
  0x3c   :  { %v395_v15 = vmul.f32 %v270_v12, %v44_v3  ;;  %v397_v16 = vmul.f32 %v270_v12, %v45_v1  ;;  %v399_v17 = vmul.f32 %v270_v12, %v46_v2  ;;  %v155_v1 = vadd.f32 %v154_v55, %v153_v57  ;;  %v94_v3 = vld [vmem:[#allocation5 + $0x3] sm:$0x1]  ;;  %v211_v12 = vld [vmem:[#allocation5 + $0xf] sm:$0x1] }
  0x3d   :  { %v193_v2 = vadd.f32 %v192_v59, %v191_v58  ;;  %v434_v8 = vadd.f32 %v114_v0, %v94_v3 }
  0x3e   :  { %v61_v18 = vmul.f32 %v395_v15, %v47_v13  ;;  %v62_v19 = vmul.f32 %v397_v16, %v49_v11  ;;  %v64_v20 = vmul.f32 %v399_v17, %v50_v14  ;;  %v436_v9 = vadd.f32 %v155_v1, %v135_v4 }
  0x3f   :  { %v438_v10 = vadd.f32 %v193_v2, %v173_v5  ;;  %v136_v24 = vmul.f32 %v132_v30, %v395_v15  ;;  %v184_v40 = vmul.f32 %v411_v32, %v399_v17  ;;  %v464_v41 = vmul.f32 %v208_v51, %v395_v15 }
  0x40   :  { %v63_v21 = vadd.f32 %v62_v19, %v61_v18  ;;  %v95_v19 = vmul.f32 %v91_v25, %v395_v15 }
  0x41   :  { %v202_v18 = vrot.slane %v438_v10, 5 }
  0x42   :  { %v65_v23 = vadd.f32 %v64_v20, %v63_v21  ;;  %v100_v20 = vmul.f32 %v91_v25, %v397_v16  ;;  %v105_v21 = vmul.f32 %v91_v25, %v399_v17  ;;  %v179_v25 = vmul.f32 %v411_v32, %v397_v16 }
  0x44   :  { %v66_v27 = vmul.f32 %v65_v23, %v395_v15  ;;  %v68_v28 = vmul.f32 %v65_v23, %v397_v16  ;;  %v70_v29 = vmul.f32 %v65_v23, %v399_v17 }
  0x46   :  { %v67_v34 = vsub.f32 %v47_v13, %v66_v27  ;;  %v69_v35 = vsub.f32 %v49_v11, %v68_v28  ;;  %v71_v36 = vsub.f32 %v50_v14, %v70_v29  ;;  %v231_v11 = vadd.f32 %v230_v7, %v229_v6 }
  0x47   :  { %v123_v13 = vrot.slane %v434_v8, 5  ;;  %v164_v14 = vrot.slane %v436_v9, 5  ;;  %v141_v27 = vmul.f32 %v132_v30, %v397_v16  ;;  %v146_v28 = vmul.f32 %v132_v30, %v399_v17 }
  0x48   :  { %v72_v43 = vmul.f32 %v67_v34, %v67_v34  ;;  %v73_v44 = vmul.f32 %v69_v35, %v69_v35  ;;  %v75_v45 = vmul.f32 %v71_v36, %v71_v36  ;;  %v446_v22 = vadd.f32 %v231_v11, %v211_v12 }
  0x49   :  { %v174_v29 = vmul.f32 %v411_v32, %v395_v15  ;;  %v467_v30 = vmul.f32 %v208_v51, %v397_v16 }
  0x4a   :  { %v74_v50 = vadd.f32 %v73_v44, %v72_v43 }
  0x4c   :  { %v76_v56 = vadd.f32 %v75_v45, %v74_v50 }
  0x4e   :  { %v77_v62 = vmax.f32 %v76_v56, 1e-24 }
  0x50   :  { %271 = vrsqrt.f32 %v77_v62 }
  0x5a   :  { %v272_v23 = vpop.eup %271 }
  0x5b   :  { %v453_v37 = vmul.f32 %v272_v23, %v67_v34  ;;  %v455_v38 = vmul.f32 %v272_v23, %v69_v35  ;;  %v457_v39 = vmul.f32 %v272_v23, %v71_v36  ;;  %v470_v34 = vmul.f32 %v208_v51, %v399_v17 }
  0x5d   :  { %v82_v35 = vmul.f32 %v457_v39, %v397_v16  ;;  %v83_v36 = vmul.f32 %v455_v38, %v399_v17  ;;  %v85_v42 = vmul.f32 %v453_v37, %v399_v17  ;;  %v86_v32 = vmul.f32 %v457_v39, %v395_v15 }
  0x5e   :  { %v88_v43 = vmul.f32 %v455_v38, %v395_v15  ;;  %v89_v44 = vmul.f32 %v453_v37, %v397_v16  ;;  %v96_v45 = vmul.f32 %v404_v26, %v453_v37  ;;  %v101_v48 = vmul.f32 %v404_v26, %v455_v38 }
  0x5f   :  { %v84_v50 = vsub.f32 %v82_v35, %v83_v36  ;;  %v87_v51 = vsub.f32 %v85_v42, %v86_v32  ;;  %v106_v17 = vmul.f32 %v404_v26, %v457_v39  ;;  %v137_v53 = vmul.f32 %v409_v31, %v453_v37 }
  0x60   :  { %v90_v54 = vsub.f32 %v88_v43, %v89_v44  ;;  %v97_v15 = vadd.f32 %v96_v45, %v95_v19  ;;  %v102_v55 = vadd.f32 %v101_v48, %v100_v20  ;;  %v142_v16 = vmul.f32 %v409_v31, %v455_v38 }
  0x61   :  { %v98_v56 = vmul.f32 %v418_v46, %v84_v50  ;;  %v103_v57 = vmul.f32 %v418_v46, %v87_v51  ;;  %v107_v58 = vadd.f32 %v106_v17, %v105_v21  ;;  %v138_v59 = vadd.f32 %v137_v53, %v136_v24 }
  0x62   :  { %v108_v60 = vmul.f32 %v418_v46, %v90_v54  ;;  %v139_v61 = vmul.f32 %v420_v47, %v84_v50  ;;  %v143_v26 = vadd.f32 %v142_v16, %v141_v27  ;;  %v144_v62 = vmul.f32 %v420_v47, %v87_v51 }
  0x63   :  { %v99_v0 = vadd.f32 %v98_v56, %v97_v15  ;;  %v104_v1 = vadd.f32 %v103_v57, %v102_v55  ;;  %v147_v2 = vmul.f32 %v409_v31, %v457_v39  ;;  %v149_v3 = vmul.f32 %v420_v47, %v90_v54 }
  0x64   :  { %v109_v4 = vadd.f32 %v108_v60, %v107_v58  ;;  %v140_v5 = vadd.f32 %v139_v61, %v138_v59  ;;  %v145_v6 = vadd.f32 %v144_v62, %v143_v26  ;;  %v175_v7 = vmul.f32 %v413_v33, %v453_v37 }
  0x65   :  { %v117_v11 = vrot.slane %v104_v1, 7  ;;  %v148_v46 = vadd.f32 %v147_v2, %v146_v28  ;;  %v177_v12 = vmul.f32 %v423_v49, %v84_v50  ;;  %v180_v19 = vmul.f32 %v413_v33, %v455_v38 }
  0x66   :  { %v120_v20 = vrot.slane %v109_v4, 6  ;;  %v158_v21 = vrot.slane %v145_v6, 7  ;;  %v176_v23 = vadd.f32 %v175_v7, %v174_v29  ;;  %v182_v31 = vmul.f32 %v423_v49, %v87_v51 }
  0x67   :  { %v126_v47 = vsel %vm125_vm0, %v99_v0, %v117_v11  ;;  %v150_v24 = vadd.f32 %v149_v3, %v148_v46  ;;  %v181_v27 = vadd.f32 %v180_v19, %v179_v25  ;;  %v185_v35 = vmul.f32 %v413_v33, %v457_v39 }
  0x68   :  { %v128_v36 = vsel %vm127_vm1, %v126_v47, %v120_v20  ;;  %v166_v28 = vsel %vm125_vm0, %v140_v5, %v158_v21  ;;  %v178_v42 = vadd.f32 %v177_v12, %v176_v23  ;;  %v187_v32 = vmul.f32 %v423_v49, %v90_v54 }
  0x69   :  { %v130_v29 = vsel %vm129_vm2, %v128_v36, %v123_v13  ;;  %v161_v43 = vrot.slane %v150_v24, 6  ;;  %v183_v44 = vadd.f32 %v182_v31, %v181_v27  ;;  %v186_v45 = vadd.f32 %v185_v35, %v184_v40 }
  0x6a   :  { %131 = vst [vmem:[#allocation7] sm:$0xf] %v130_v29  ;;  %v213_v25 = vmul.f32 %v425_v52, %v453_v37  ;;  %v215_v33 = vmul.f32 %v431_v63, %v84_v50  ;;  %v218_v48 = vmul.f32 %v425_v52, %v455_v38  ;;  %v220_v17 = vmul.f32 %v431_v63, %v87_v51 }
  0x6b   :  { %v167_v49 = vsel %vm127_vm1, %v166_v28, %v161_v43  ;;  %v188_v53 = vadd.f32 %v187_v32, %v186_v45  ;;  %v196_v8 = vrot.slane %v183_v44, 7  ;;  %v223_v13 = vmul.f32 %v425_v52, %v457_v39 }
  0x6c   :  { %v168_v40 = vsel %vm129_vm2, %v167_v49, %v164_v14  ;;  %v214_v37 = vadd.f32 %v213_v25, %v464_v41  ;;  %v219_v50 = vadd.f32 %v218_v48, %v467_v30  ;;  %v225_v15 = vmul.f32 %v431_v63, %v90_v54 }
  0x6d   :  { %169 = vst [vmem:[#allocation7 + $0x4] sm:$0xf] %v168_v40  ;;  %v199_v38 = vrot.slane %v188_v53, 6  ;;  %v204_v51 = vsel %vm125_vm0, %v178_v42, %v196_v8  ;;  %v224_v55 = vadd.f32 %v223_v13, %v470_v34  ;;  %v240_v41 = vrot.slane %v446_v22, 5 }
  0x6e   :  { %v216_v16 = vadd.f32 %v215_v33, %v214_v37  ;;  %v221_v56 = vadd.f32 %v220_v17, %v219_v50 }
  0x6f   :  { %v205_v52 = vsel %vm127_vm1, %v204_v51, %v199_v38  ;;  %v226_v39 = vadd.f32 %v225_v15, %v224_v55 }
  0x70   :  { %v206_v9 = vsel %vm129_vm2, %v205_v52, %v202_v18  ;;  %v234_v14 = vrot.slane %v221_v56, 7 }
  0x71   :  { %207 = vst [vmem:[#allocation7 + $0x8] sm:$0xf] %v206_v9  ;;  %v237_v63 = vrot.slane %v226_v39, 6 }
  0x72   :  { %v242_v30 = vsel %vm125_vm0, %v216_v16, %v234_v14 }
  0x73   :  { %v243_v34 = vsel %vm127_vm1, %v242_v30, %v237_v63 }
  0x74   :  { %v244_v54 = vsel %vm129_vm2, %v243_v34, %v240_v41 }
  0x75   :  { %245 = vst [vmem:[#allocation7 + $0xc] sm:$0xf] %v244_v54 }
  0x76   :  { %328 = shalt.err (!%p325_p6)
}
  0x77   :  { %s329_s10 = scalar_lea.hbm %s559_s2, 256 }
  0x78   :  { %p330_p7 = scmp.ne.s32.totalorder %s559_s2, %s329_s10  ;;  %p333_p8 = scmp.lt.u32.totalorder %s329_s10, %s559_s2 }
  0x7a   :  { %p335_p9 = pnand %p333_p8, %p330_p7 }
  0x7c   :  { %338 = shalt.err (!%p335_p9)
}
  0x7d   :  { %257 = dma.vmem_to_hbm [thread:$0]  %s252_s6, 256, %s559_s2, [#allocation4], %s346_s19, %s346_s19, %s347_s20  }
  0x7e   :  { %343 = dma.done.wait [#allocation4], 256  }
  0x7f   :  { %344 = vsyncadd [#allocation4], 4294967040 }
  0x80   :  { %261 = vsyncpa [#allocation3], 1 }
  0x81   :  { %262 = vsyncpa [#allocation6], 1 }
  0x82   :  { %263 = vsyncpa [#allocation4], 1 }

</bundles_post_ra>
